<compile_context>
chip_gen: v7x
topology: tpu7x:2x2x1
jax: 0.10.0
libtpu: 0.0.40
codegen_flags: <defaults>
</compile_context>

<pallas_src>
import functools

import jax
import jax.numpy as jnp
from jax.experimental import pallas as pl
from jax.experimental.pallas import tpu as pltpu


def _round_up(x, m):
    return (x + m - 1) // m * m


def _mlp_kernel(x_ref, w1_ref, b1_ref, w2_ref, b2_ref, o_ref):
    # x:  [TB, IN]  native dtype   w1: [IN, Hp] bf16   b1: [1, Hp] f32
    # w2: [Hp, Op]  bf16           b2: [1, Op]  f32    o:  [TB, Op] bf16
    x = x_ref[...].astype(jnp.bfloat16)            # on-chip cast (no extra HBM pass)
    h = jnp.dot(x, w1_ref[...], preferred_element_type=jnp.float32)
    h = jnp.maximum(h + b1_ref[...], 0.0)          # bias + ReLU on f32 accumulator
    out = jnp.dot(h.astype(jnp.bfloat16), w2_ref[...],
                  preferred_element_type=jnp.float32)
    o_ref[...] = (out + b2_ref[...]).astype(o_ref.dtype)


def pack_params(w1, b1, w2, b2):
    """One-time weight packing: pad feature dims to lane-dense 128, bf16 weights.

    Padded hidden units have zero weights+bias (contribute exactly 0 after ReLU);
    padded output columns are all-zero and sliced away in mlp_forward.
    """
    hidden = w1.shape[1]
    out_dim = w2.shape[1]
    h_pad = _round_up(hidden, 128)
    o_pad = _round_up(out_dim, 128)
    w1_p = jnp.pad(w1, ((0, 0), (0, h_pad - hidden))).astype(jnp.bfloat16)
    b1_p = jnp.pad(b1, (0, h_pad - hidden)).reshape(1, h_pad).astype(jnp.float32)
    w2_p = jnp.pad(w2, ((0, h_pad - hidden), (0, o_pad - out_dim))).astype(jnp.bfloat16)
    b2_p = jnp.pad(b2, (0, o_pad - out_dim)).reshape(1, o_pad).astype(jnp.float32)
    return w1_p, b1_p, w2_p, b2_p


@functools.partial(jax.jit, static_argnames=("input_size", "out_size", "max_tile_b"))
def mlp_forward(x_img, w1_p, b1_p, w2_p, b2_p, *,
                input_size=784, out_size=10, max_tile_b=1024):
    # Glue: flatten image exactly like `data.view(-1, input_size)`.
    x = x_img.reshape(-1, input_size)
    batch = x.shape[0]
    h_pad = w1_p.shape[1]
    o_pad = w2_p.shape[1]

    # Tile-aware batch tiling:
    #   * tiles are multiples of 16 rows (bf16 output sublane packing),
    #   * waste is bounded by ~16 rows/tile instead of up to tb-1,
    #   * large single-tile batches are split in two so both v7x TCs get work.
    num_tiles = pl.cdiv(batch, max_tile_b)
    if num_tiles == 1 and batch >= 512:
        num_tiles = 2
    tb = _round_up(pl.cdiv(batch, num_tiles), 16)
    b_pad = num_tiles * tb
    if b_pad != batch:
        x = jnp.pad(x, ((0, b_pad - batch), (0, 0)))

    flops = 2 * b_pad * (input_size * h_pad + h_pad * o_pad)
    bytes_accessed = (
        x.size * x.dtype.itemsize                   # activations (native dtype)
        + w1_p.size * 2 + w2_p.size * 2             # bf16 weights
        + (b1_p.size + b2_p.size) * 4               # f32 biases
        + b_pad * o_pad * 2                         # bf16 output
    )

    out_p = pl.pallas_call(
        _mlp_kernel,
        out_shape=jax.ShapeDtypeStruct((b_pad, o_pad), jnp.bfloat16),
        grid=(num_tiles,),
        in_specs=[
            pl.BlockSpec((tb, input_size), lambda i: (i, 0)),     # x streams over batch
            pl.BlockSpec((input_size, h_pad), lambda i: (0, 0)),  # weights VMEM-resident
            pl.BlockSpec((1, h_pad), lambda i: (0, 0)),
            pl.BlockSpec((h_pad, o_pad), lambda i: (0, 0)),
            pl.BlockSpec((1, o_pad), lambda i: (0, 0)),
        ],
        out_specs=pl.BlockSpec((tb, o_pad), lambda i: (i, 0)),
        compiler_params=pltpu.CompilerParams(
            dimension_semantics=("parallel",),      # batch tiles independent (megacore)
        ),
        cost_estimate=pl.CostEstimate(
            flops=flops, transcendentals=0, bytes_accessed=bytes_accessed
        ),
    )(x, w1_p, b1_p, w2_p, b2_p)

    # Drop batch padding and padded (all-zero) logit columns; return f32 logits.
    return out_p[:batch, :out_size].astype(jnp.float32)


def init_params(key, input_size=784, hidden_size=100, output_size=10):
    # Deterministic init mimicking torch.nn.Linear default:
    # U(-1/sqrt(fan_in), 1/sqrt(fan_in)). Stored as [in, out] (transposed vs torch).
    k1, k2, k3, k4 = jax.random.split(key, 4)
    bound1 = 1.0 / jnp.sqrt(jnp.float32(input_size))
    bound2 = 1.0 / jnp.sqrt(jnp.float32(hidden_size))
    w1 = jax.random.uniform(k1, (input_size, hidden_size), jnp.float32, -bound1, bound1)
    b1 = jax.random.uniform(k2, (hidden_size,), jnp.float32, -bound1, bound1)
    w2 = jax.random.uniform(k3, (hidden_size, output_size), jnp.float32, -bound2, bound2)
    b2 = jax.random.uniform(k4, (output_size,), jnp.float32, -bound2, bound2)
    return w1, b1, w2, b2


if __name__ == "__main__":
    INPUT_SIZE, HIDDEN, OUT = 784, 100, 10
    BATCH = 8

    key = jax.random.PRNGKey(0)
    k_x, k_p = jax.random.split(key)

    # MNIST-like input in NCHW: [B, 1, 28, 28]  (28*28 = 784 = input_size)
    x_img = jax.random.normal(k_x, (BATCH, 1, 28, 28), jnp.float32)
    w1, b1, w2, b2 = init_params(k_p, INPUT_SIZE, HIDDEN, OUT)

    # Pack weights once (outside the per-call path), then run the kernel.
    packed = pack_params(w1, b1, w2, b2)
    logits = mlp_forward(x_img, *packed, input_size=INPUT_SIZE, out_size=OUT)
    logits = jax.block_until_ready(logits)
    assert logits.shape == (BATCH, OUT)

    # Reference matching the kernel's numerics (bf16 operands, f32 accumulation,
    # bf16 output store).
    x_flat = x_img.reshape(-1, INPUT_SIZE)
    xb = x_flat.astype(jnp.bfloat16).astype(jnp.float32)
    w1b = w1.astype(jnp.bfloat16).astype(jnp.float32)
    w2b = w2.astype(jnp.bfloat16).astype(jnp.float32)
    h_ref = jnp.maximum(xb @ w1b + b1, 0.0)
    ref_bf16 = (h_ref.astype(jnp.bfloat16).astype(jnp.float32) @ w2b + b2)
    ref_bf16 = ref_bf16.astype(jnp.bfloat16).astype(jnp.float32)
    assert jnp.allclose(logits, ref_bf16, atol=2e-2, rtol=2e-2)

    # Loose semantic check against the full-f32 reference (bf16 quantization only).
    ref_f32 = jnp.maximum(x_flat @ w1 + b1, 0.0) @ w2 + b2
    assert jnp.allclose(logits, ref_f32, atol=5e-2, rtol=5e-2)

    print("KERNEL_OK")
</pallas_src>

<mosaic_0001>
module attributes {stable_mosaic.version = 11 : i64} {
  func.func @_mlp_kernel(%arg0: i32, %arg1: memref<16x784xf32, #tpu.memory_space<vmem>>, %arg2: memref<784x128xbf16, #tpu.memory_space<vmem>>, %arg3: memref<1x128xf32, #tpu.memory_space<vmem>>, %arg4: memref<128x128xbf16, #tpu.memory_space<vmem>>, %arg5: memref<1x128xf32, #tpu.memory_space<vmem>>, %arg6: memref<16x128xbf16, #tpu.memory_space<vmem>>) attributes {dimension_semantics = [#tpu.dimension_semantics<parallel>], iteration_bounds = array<i64: 1>, scalar_prefetch = 0 : i64, scratch_operands = 0 : i64, tpu.core_type = #tpu.core_type<tc>, window_params = [{transform_indices = @transform_0, window_bounds = array<i64: 16, 784>}, {pipeline_mode = #tpu.pipeline_mode<synchronous>, transform_indices = @transform_1, window_bounds = array<i64: 784, 128>}, {pipeline_mode = #tpu.pipeline_mode<synchronous>, transform_indices = @transform_2, window_bounds = array<i64: 1, 128>}, {pipeline_mode = #tpu.pipeline_mode<synchronous>, transform_indices = @transform_3, window_bounds = array<i64: 128, 128>}, {pipeline_mode = #tpu.pipeline_mode<synchronous>, transform_indices = @transform_4, window_bounds = array<i64: 1, 128>}, {transform_indices = @transform_5, window_bounds = array<i64: 16, 128>}]} {
    %c0 = arith.constant 0 : index
    %c0_0 = arith.constant 0 : index
    %0 = vector.load %arg1[%c0, %c0_0] : memref<16x784xf32, #tpu.memory_space<vmem>>, vector<16x784xf32>
    %1 = arith.truncf %0 : vector<16x784xf32> to vector<16x784xbf16>
    %c0_1 = arith.constant 0 : index
    %c0_2 = arith.constant 0 : index
    %2 = vector.load %arg2[%c0_1, %c0_2] : memref<784x128xbf16, #tpu.memory_space<vmem>>, vector<784x128xbf16>
    %cst = arith.constant dense<0.000000e+00> : vector<16x128xf32>
    %3 = tpu.matmul %1, %2, %cst {dimension_numbers = #tpu.dot_dimension_numbers<[1], [0], [0], [1], [0, 0, 1, 1], [], []>} : vector<16x784xbf16>, vector<784x128xbf16>, vector<16x128xf32> -> vector<16x128xf32>
    %c0_3 = arith.constant 0 : index
    %c0_4 = arith.constant 0 : index
    %4 = vector.load %arg3[%c0_3, %c0_4] : memref<1x128xf32, #tpu.memory_space<vmem>>, vector<1x128xf32>
    %5 = vector.broadcast %4 : vector<1x128xf32> to vector<16x128xf32>
    %6 = arith.addf %3, %5 : vector<16x128xf32>
    %cst_5 = arith.constant 0.000000e+00 : f32
    %7 = vector.broadcast %cst_5 : f32 to vector<16x128xf32>
    %8 = arith.maximumf %6, %7 : vector<16x128xf32>
    %9 = arith.truncf %8 : vector<16x128xf32> to vector<16x128xbf16>
    %c0_6 = arith.constant 0 : index
    %c0_7 = arith.constant 0 : index
    %10 = vector.load %arg4[%c0_6, %c0_7] : memref<128x128xbf16, #tpu.memory_space<vmem>>, vector<128x128xbf16>
    %cst_8 = arith.constant dense<0.000000e+00> : vector<16x128xf32>
    %11 = tpu.matmul %9, %10, %cst_8 {dimension_numbers = #tpu.dot_dimension_numbers<[1], [0], [0], [1], [0, 0, 1, 1], [], []>} : vector<16x128xbf16>, vector<128x128xbf16>, vector<16x128xf32> -> vector<16x128xf32>
    %c0_9 = arith.constant 0 : index
    %c0_10 = arith.constant 0 : index
    %12 = vector.load %arg5[%c0_9, %c0_10] : memref<1x128xf32, #tpu.memory_space<vmem>>, vector<1x128xf32>
    %13 = vector.broadcast %12 : vector<1x128xf32> to vector<16x128xf32>
    %14 = arith.addf %11, %13 : vector<16x128xf32>
    %15 = arith.truncf %14 : vector<16x128xf32> to vector<16x128xbf16>
    %c0_11 = arith.constant 0 : index
    %c0_12 = arith.constant 0 : index
    %16 = vector.load %arg6[%c0_11, %c0_12] : memref<16x128xbf16, #tpu.memory_space<vmem>>, vector<16x128xbf16>
    tpu.vector_store %arg6[%c0_11, %c0_12], %15 {strides = array<i32>} : memref<16x128xbf16, #tpu.memory_space<vmem>>, vector<16x128xbf16>,
    return
  }
  func.func @transform_0(%arg0: i32) -> (i32, i32) {
    %c0_i32 = arith.constant 0 : i32
    %c0_i32_0 = arith.constant 0 : i32
    return %arg0, %c0_i32 : i32, i32
  }
  func.func @transform_1(%arg0: i32) -> (i32, i32) {
    %c0_i32 = arith.constant 0 : i32
    %c0_i32_0 = arith.constant 0 : i32
    %c0_i32_1 = arith.constant 0 : i32
    return %c0_i32, %c0_i32_0 : i32, i32
  }
  func.func @transform_2(%arg0: i32) -> (i32, i32) {
    %c0_i32 = arith.constant 0 : i32
    %c0_i32_0 = arith.constant 0 : i32
    %c0_i32_1 = arith.constant 0 : i32
    return %c0_i32, %c0_i32_0 : i32, i32
  }
  func.func @transform_3(%arg0: i32) -> (i32, i32) {
    %c0_i32 = arith.constant 0 : i32
    %c0_i32_0 = arith.constant 0 : i32
    %c0_i32_1 = arith.constant 0 : i32
    return %c0_i32, %c0_i32_0 : i32, i32
  }
  func.func @transform_4(%arg0: i32) -> (i32, i32) {
    %c0_i32 = arith.constant 0 : i32
    %c0_i32_0 = arith.constant 0 : i32
    %c0_i32_1 = arith.constant 0 : i32
    return %c0_i32, %c0_i32_0 : i32, i32
  }
  func.func @transform_5(%arg0: i32) -> (i32, i32) {
    %c0_i32 = arith.constant 0 : i32
    %c0_i32_0 = arith.constant 0 : i32
    return %arg0, %c0_i32 : i32, i32
  }
}

</mosaic_0001>

<bundles_post_ra>
// kernel: mlp_forward.1
= control target key start
LH: loop header
LB: loop body
LE: loop exit
PB: predicated region body
PF: predicated region fallthrough
CT: control target
= control target key end

     0   :  { %v969_v43 = vmov 0.0   ;;  %vm970_vm0 = vmmov 0   ;;  %vm441_vm1 = vcmask 130048   ;;  %s1236_s1 = inlined_call_operand.vmem [shape: bf16[784,128], index: 1, kind: input, shape index: {}]   ;;  %s1237_s0 = inlined_call_operand.vmem [shape: f32[16,784], index: 0, kind: input, shape index: {}]   ;;  %s1238_s3 = inlined_call_operand.vmem [shape: bf16[128,128], index: 3, kind: input, shape index: {}]   ;;  %s1239_s2 = inlined_call_operand.vmem [shape: f32[1,128], index: 2, kind: input, shape index: {}]   ;;  %s1240_s4 = inlined_call_operand.vmem [shape: f32[1,128], index: 4, kind: input, shape index: {}]   ;;  %s1241_s5 = inlined_call_operand.vmem [shape: bf16[16,128], index: 5, kind: output, shape index: {}]  }
   0x1   :  { %v912_v0 = vld [vmem:[%s1236_s1 + $0x40] sm:$0xff]   ;;  %v916_v4 = vld [vmem:[%s1236_s1 + $0x48] sm:$0xff]   ;;  %v920_v8 = vld [vmem:[%s1236_s1 + $0x50] sm:$0xff]  }
   0x2   :  { %v913_v1 = vld [vmem:[%s1236_s1] sm:$0xff]   ;;  %807 = vmatprep.subr.bf16.mxu0 %v912_v0  ;;  %v917_v5 = vld [vmem:[%s1236_s1 + $0x8] sm:$0xff]   ;;  %v921_v9 = vld [vmem:[%s1236_s1 + $0x10] sm:$0xff]  }
   0x3   :  { %v914_v2 = vld [vmem:[%s1236_s1 + $0xc0] sm:$0xff]   ;;  %808 = vmatpush3.bf16.msra.mxu0 %v913_v1  ;;  %v918_v6 = vld [vmem:[%s1236_s1 + $0xc8] sm:$0xff]   ;;  %v922_v10 = vld [vmem:[%s1236_s1 + $0xd0] sm:$0xff]  }
   0x4   :  { %v915_v3 = vld [vmem:[%s1236_s1 + $0x80] sm:$0xff]   ;;  %829 = vmatprep.subr.bf16.mxu1 %v914_v2  ;;  %809 = vmatprep.subr.bf16.mxu0 %v916_v4  ;;  %v919_v7 = vld [vmem:[%s1236_s1 + $0x88] sm:$0xff]   ;;  %v923_v11 = vld [vmem:[%s1236_s1 + $0x90] sm:$0xff]  }
   0x5   :  { %830 = vmatpush3.bf16.msra.mxu1 %v915_v3  ;;  %v924_v12 = vld [vmem:[%s1236_s1 + $0x58] sm:$0xff]   ;;  %v928_v16 = vld [vmem:[%s1236_s1 + $0x60] sm:$0xff]   ;;  %v932_v20 = vld [vmem:[%s1236_s1 + $0x68] sm:$0xff]  }
   0x6   :  { %831 = vmatprep.subr.bf16.mxu1 %v918_v6  ;;  %v925_v13 = vld [vmem:[%s1236_s1 + $0x18] sm:$0xff]   ;;  %v929_v17 = vld [vmem:[%s1236_s1 + $0x20] sm:$0xff]   ;;  %v933_v21 = vld [vmem:[%s1236_s1 + $0x28] sm:$0xff]  }
   0x7   :  { %810 = vmatpush3.bf16.msra.mxu0 %v917_v5  ;;  %v926_v14 = vld [vmem:[%s1236_s1 + $0xd8] sm:$0xff]   ;;  %v930_v18 = vld [vmem:[%s1236_s1 + $0xe0] sm:$0xff]   ;;  %v934_v22 = vld [vmem:[%s1236_s1 + $0xe8] sm:$0xff]  }
   0x8   :  { %811 = vmatprep.subr.bf16.mxu0 %v920_v8  ;;  %v927_v15 = vld [vmem:[%s1236_s1 + $0x98] sm:$0xff]   ;;  %v931_v19 = vld [vmem:[%s1236_s1 + $0xa0] sm:$0xff]   ;;  %v935_v23 = vld [vmem:[%s1236_s1 + $0xa8] sm:$0xff]  }
   0x9   :  { %832 = vmatpush3.bf16.msra.mxu1 %v919_v7  ;;  %v936_v24 = vld [vmem:[%s1236_s1 + $0x70] sm:$0xff]   ;;  %v940_v28 = vld [vmem:[%s1236_s1 + $0x78] sm:$0xff]   ;;  %v22_v31 = vld [vmem:[%s1237_s0 + $0x8] sm:$0xff] }
   0xa   :  { %833 = vmatprep.subr.bf16.mxu1 %v922_v10  ;;  %v937_v25 = vld [vmem:[%s1236_s1 + $0x30] sm:$0xff]   ;;  %v941_v29 = vld [vmem:[%s1236_s1 + $0x38] sm:$0xff]   ;;  %v29_v32 = vld [vmem:[%s1237_s0 + $0x40] sm:$0xff] }
   0xb   :  { %812 = vmatpush3.bf16.msra.mxu0 %v921_v9  ;;  %v938_v26 = vld [vmem:[%s1236_s1 + $0xf0] sm:$0xff]   ;;  %v942_v30 = vld [vmem:[%s1236_s1 + $0xf8] sm:$0xff]   ;;  %v36_v33 = vpack.c.bf16 %v29_v32, %v22_v31  ;;  %v21_v35 = vld [vmem:[%s1237_s0] sm:$0xff] }
   0xc   :  { %813 = vmatprep.subr.bf16.mxu0 %v924_v12  ;;  %v939_v27 = vld [vmem:[%s1236_s1 + $0xb0] sm:$0xff]   ;;  %v943_v34 = vld [vmem:[%s1236_s1 + $0xb8] sm:$0xff]   ;;  %v944_v38 = vld [vmem:[%s1236_s1 + $0x140] sm:$0xff]  }
   0xd   :  { %834 = vmatpush3.bf16.msra.mxu1 %v923_v11  ;;  %v28_v36 = vld [vmem:[%s1237_s0 + $0x38] sm:$0xff]  ;;  %477 = vmatprep.mubr.bf16.mxu0 %v36_v33  ;;  %v31_v40 = vld [vmem:[%s1237_s0 + $0x50] sm:$0xff]  ;;  %v945_v42 = vld [vmem:[%s1236_s1 + $0x100] sm:$0xff]  }
   0xe   :  { %835 = vmatprep.subr.bf16.mxu1 %v926_v14  ;;  %v35_v37 = vpack.c.bf16 %v28_v36, %v21_v35  ;;  %v24_v39 = vld [vmem:[%s1237_s0 + $0x18] sm:$0xff]  ;;  %v23_v44 = vld [vmem:[%s1237_s0 + $0x10] sm:$0xff]  ;;  %v30_v45 = vld [vmem:[%s1237_s0 + $0x48] sm:$0xff] }
   0xf   :  { %814 = vmatpush3.bf16.msra.mxu0 %v925_v13  ;;  %v38_v41 = vpack.c.bf16 %v31_v40, %v24_v39  ;;  %v37_v46 = vpack.c.bf16 %v30_v45, %v23_v44  ;;  %v946_v47 = vld [vmem:[%s1236_s1 + $0x148] sm:$0xff]   ;;  %v948_v49 = vld [vmem:[%s1236_s1 + $0x150] sm:$0xff]   ;;  %v950_v51 = vld [vmem:[%s1236_s1 + $0x158] sm:$0xff]  }
  0x10   :  { %815 = vmatprep.subr.bf16.mxu0 %v928_v16  ;;  %v947_v48 = vld [vmem:[%s1236_s1 + $0x108] sm:$0xff]   ;;  %v949_v50 = vld [vmem:[%s1236_s1 + $0x110] sm:$0xff]   ;;  %v951_v52 = vld [vmem:[%s1236_s1 + $0x118] sm:$0xff]  }
  0x11   :  { %836 = vmatpush3.bf16.msra.mxu1 %v927_v15  ;;  %518 = vmatprep.mubr.bf16.mxu1 %v38_v41  ;;  %v952_v53 = vld [vmem:[%s1236_s1 + $0x160] sm:$0xff]   ;;  %v954_v55 = vld [vmem:[%s1236_s1 + $0x168] sm:$0xff]   ;;  %v27_v61 = vld [vmem:[%s1237_s0 + $0x30] sm:$0xff] }
  0x12   :  { %837 = vmatprep.subr.bf16.mxu1 %v930_v18  ;;  %v953_v54 = vld [vmem:[%s1236_s1 + $0x120] sm:$0xff]   ;;  %v26_v57 = vld [vmem:[%s1237_s0 + $0x28] sm:$0xff]  ;;  %v956_v63 = vld [vmem:[%s1236_s1 + $0x170] sm:$0xff]  }
  0x13   :  { %816 = vmatpush3.bf16.msra.mxu0 %v929_v17  ;;  %v960_v56 = vld [vmem:[%s1236_s1 + $0x180] sm:$0xff]   ;;  %v955_v59 = vld [vmem:[%s1236_s1 + $0x128] sm:$0xff]   ;;  %v957_v1 = vld [vmem:[%s1236_s1 + $0x130] sm:$0xff]  }
  0x14   :  { %817 = vmatprep.subr.bf16.mxu0 %v932_v20  ;;  %v33_v58 = vld [vmem:[%s1237_s0 + $0x60] sm:$0xff]  ;;  %v34_v62 = vld [vmem:[%s1237_s0 + $0x68] sm:$0xff]  ;;  %v958_v2 = vld [vmem:[%s1236_s1 + $0x178] sm:$0xff]  }
  0x15   :  { %838 = vmatpush3.bf16.msra.mxu1 %v931_v19  ;;  %v40_v60 = vpack.c.bf16 %v33_v58, %v26_v57  ;;  %v41_v0 = vpack.c.bf16 %v34_v62, %v27_v61  ;;  %v959_v3 = vld [vmem:[%s1236_s1 + $0x138] sm:$0xff]   ;;  %v25_v4 = vld [vmem:[%s1237_s0 + $0x20] sm:$0xff]  ;;  %v962_v8 = vld [vmem:[%s1238_s3 + $0x8] sm:$0xff]  }
  0x16   :  { %839 = vmatprep.subr.bf16.mxu1 %v934_v22  ;;  %v32_v5 = vld [vmem:[%s1237_s0 + $0x58] sm:$0xff]  ;;  %v961_v7 = vld [vmem:[%s1238_s3] sm:$0xff]   ;;  %v963_v9 = vld [vmem:[%s1238_s3 + $0x10] sm:$0xff]  }
  0x17   :  { %818 = vmatpush3.bf16.msra.mxu0 %v933_v21  ;;  %v39_v6 = vpack.c.bf16 %v32_v5, %v25_v4  ;;  %v964_v10 = vld [vmem:[%s1238_s3 + $0x18] sm:$0xff]   ;;  %v965_v11 = vld [vmem:[%s1238_s3 + $0x20] sm:$0xff]   ;;  %v966_v12 = vld [vmem:[%s1238_s3 + $0x28] sm:$0xff]  }
  0x18   :  { %819 = vmatprep.subr.bf16.mxu0 %v936_v24  ;;  %v967_v13 = vld [vmem:[%s1238_s3 + $0x30] sm:$0xff]   ;;  %v968_v14 = vld [vmem:[%s1238_s3 + $0x38] sm:$0xff]   ;;  %v738_v16 = vld [vmem:[%s1239_s2] ss:$0 sm:$0xff] }
  0x19   :  { %840 = vmatpush3.bf16.msra.mxu1 %v935_v23 }
  0x1a   :  { %841 = vmatprep.subr.bf16.mxu1 %v938_v26 }
  0x1b   :  { %820 = vmatpush3.bf16.msra.mxu0 %v937_v25 }
  0x1c   :  { %821 = vmatprep.subr.bf16.mxu0 %v940_v28 }
  0x1d   :  { %842 = vmatpush3.bf16.msra.mxu1 %v939_v27 }
  0x1e   :  { %843 = vmatprep.subr.bf16.mxu1 %v942_v30 }
  0x1f   :  { %822 = vmatpush3.bf16.msra.mxu0 %v941_v29 }
  0x20   :  { %851 = vmatprep.subr.bf16.mxu0 %v944_v38 }
  0x21   :  { %844 = vmatpush3.bf16.msra.mxu1 %v943_v34 }
  0x22   :  { %884 = vmatprep.subr.bf16.mxu1 %v969_v43  ;;  %478 = vmatmul.mubr.bf16.vlgmr.msra.gmra.mrb[0].mxu0 %v35_v37 }
  0x23   :  { %852 = vmatpush3.bf16.msra.mxu0 %v945_v42  ;;  %559 = vmatprep.mubr.bf16.mxu0 %v40_v60 }
  0x24   :  { %519 = vmatmul.mubr.bf16.vlgmr.msra.gmra.mrb[0].mxu1 %v37_v46  ;;  %853 = vmatprep.subr.bf16.mxu0 %v946_v47 }
  0x25   :  { %886 = vmatprep.mubr.msk.bf16.mxu1 %vm970_vm0, %v969_v43  ;;  %885 = vmatpush3.bf16.msra.mxu1 %v960_v56 }
  0x26   :  { %890 = vmatprep.subr.bf16.mxu1 %v969_v43 }
  0x27   :  { %854 = vmatpush3.bf16.msra.mxu0 %v947_v48 }
  0x28   :  { %855 = vmatprep.subr.bf16.mxu0 %v948_v49  ;;  %v789_v49 = vld [vmem:[%s1240_s4] ss:$0 sm:$0xff] }
  0x2b   :  { %856 = vmatpush3.bf16.msra.mxu0 %v949_v50 }
  0x2c   :  { %857 = vmatprep.subr.bf16.mxu0 %v950_v51  ;;  %887 = vmatmul.mubr.msk.bf16.vlgmr.msra.gmra.mrb[4].mxu1 %vm441_vm1, %v41_v0 }
  0x2d   :  { %906 = vmatprep.mubr.msk.bf16.mxu1 %vm970_vm0, %v969_v43  ;;  %891 = vmatpush3.bf16.msra.mxu1 %v961_v7 }
  0x2e   :  { %892 = vmatprep.subr.bf16.mxu1 %v969_v43 }
  0x2f   :  { %858 = vmatpush3.bf16.msra.mxu0 %v951_v52 }
  0x30   :  { %859 = vmatprep.subr.bf16.mxu0 %v952_v53 }
  0x31   :  { %893 = vmatpush3.bf16.msra.mxu1 %v962_v8 }
  0x32   :  { %894 = vmatprep.subr.bf16.mxu1 %v969_v43 }
  0x33   :  { %860 = vmatpush3.bf16.msra.mxu0 %v953_v54 }
  0x34   :  { %861 = vmatprep.subr.bf16.mxu0 %v954_v55 }
  0x35   :  { %895 = vmatpush3.bf16.msra.mxu1 %v963_v9 }
  0x36   :  { %896 = vmatprep.subr.bf16.mxu1 %v969_v43 }
  0x37   :  { %862 = vmatpush3.bf16.msra.mxu0 %v955_v59 }
  0x38   :  { %863 = vmatprep.subr.bf16.mxu0 %v956_v63 }
  0x39   :  { %897 = vmatpush3.bf16.msra.mxu1 %v964_v10 }
  0x3a   :  { %898 = vmatprep.subr.bf16.mxu1 %v969_v43 }
  0x3b   :  { %864 = vmatpush3.bf16.msra.mxu0 %v957_v1 }
  0x3c   :  { %865 = vmatprep.subr.bf16.mxu0 %v958_v2 }
  0x3d   :  { %899 = vmatpush3.bf16.msra.mxu1 %v965_v11 }
  0x3e   :  { %900 = vmatprep.subr.bf16.mxu1 %v969_v43 }
  0x3f   :  { %866 = vmatpush3.bf16.msra.mxu0 %v959_v3 }
  0x41   :  { %901 = vmatpush3.bf16.msra.mxu1 %v966_v12 }
  0x42   :  { %560 = vmatmul.mubr.bf16.vlgmr.msra.gmra.mrb[4].mxu0 %v39_v6  ;;  %902 = vmatprep.subr.bf16.mxu1 %v969_v43 }
  0x45   :  { %903 = vmatpush3.bf16.msra.mxu1 %v967_v13 }
  0x46   :  { %904 = vmatprep.subr.bf16.mxu1 %v969_v43 }
  0x49   :  { %905 = vmatpush3.bf16.msra.mxu1 %v968_v14 }
  0xf5   :  { %v823_v15 = vpop.f32.mrb[0].mxu0 }
  0xf6   :  { %v824_v17 = vpop.f32.mrb[1].mxu0 }
  0xf7   :  { %v825_v18 = vadd.f32 %v824_v17, %v823_v15  ;;  %v826_v19 = vpop.f32.mrb[2].mxu0  ;;  %v845_v20 = vpop.f32.mrb[0].mxu1 }
  0xf8   :  { %v827_v21 = vpop.f32.mrb[3].mxu0  ;;  %v846_v24 = vpop.f32.mrb[1].mxu1 }
  0xf9   :  { %v480_v22 = vadd.f32 %v825_v18, %v738_v16  ;;  %v828_v23 = vadd.f32 %v827_v21, %v826_v19  ;;  %v847_v25 = vadd.f32 %v846_v24, %v845_v20  ;;  %v848_v26 = vpop.f32.mrb[2].mxu1 }
  0xfa   :  { %v849_v28 = vpop.f32.mrb[3].mxu1 }
  0xfb   :  { %v483_v27 = vadd.f32 %v828_v23, %v738_v16  ;;  %v521_v29 = vadd.f32 %v847_v25, %v480_v22  ;;  %v850_v30 = vadd.f32 %v849_v28, %v848_v26 }
  0xfd   :  { %v524_v31 = vadd.f32 %v850_v30, %v483_v27 }
  0xff   :  { %v602_v32 = vpop.f32.mrb[4].mxu1 }
 0x100   :  { %v888_v33 = vpop.f32.mrb[5].mxu1 }
 0x101   :  { %v605_v34 = vpop.f32.mrb[6].mxu1 }
 0x102   :  { %v889_v35 = vpop.f32.mrb[7].mxu1 }
 0x115   :  { %v867_v36 = vpop.f32.mrb[4].mxu0 }
 0x116   :  { %v868_v37 = vpop.f32.mrb[5].mxu0 }
 0x117   :  { %v869_v38 = vadd.f32 %v868_v37, %v867_v36  ;;  %v870_v39 = vpop.f32.mrb[6].mxu0 }
 0x118   :  { %v871_v40 = vpop.f32.mrb[7].mxu0 }
 0x119   :  { %v562_v41 = vadd.f32 %v869_v38, %v521_v29  ;;  %v872_v42 = vadd.f32 %v871_v40, %v870_v39 }
 0x11b   :  { %v603_v43 = vadd.f32 %v602_v32, %v562_v41  ;;  %v565_v44 = vadd.f32 %v872_v42, %v524_v31 }
 0x11d   :  { %v606_v45 = vadd.f32 %v605_v34, %v565_v44  ;;  %v609_v46 = vmax.f32 %v603_v43, 0.0 }
 0x11f   :  { %v610_v47 = vmax.f32 %v606_v45, 0.0 }
 0x121   :  { %v611_v48 = vpack.c.bf16 %v610_v47, %v609_v46 }
 0x123   :  { %907 = vmatmul.mubr.bf16.vlgmr.msra.gmra.mrb[8].mxu1 %v611_v48 }
 0x1f6   :  { %v717_v50 = vpop.f32.mrb[8].mxu1 }
 0x1f7   :  { %v908_v51 = vpop.f32.mrb[9].mxu1  ;;  %v718_v53 = vadd.f32 %v789_v49, %v717_v50 }
 0x1f8   :  { %v720_v52 = vpop.f32.mrb[10].mxu1 }
 0x1f9   :  { %v721_v54 = vadd.f32 %v789_v49, %v720_v52  ;;  %v909_v55 = vpop.f32.mrb[11].mxu1 }
 0x1fb   :  { %v805_v56 = vpack.c.bf16 %v721_v54, %v718_v53 }
 0x1fd   :  { %806 = vst [vmem:[%s1241_s5] sm:$0xff] %v805_v56  }

</bundles_post_ra>
